<compile_context>
chip_gen: v6e
topology: v6e:2x2x1
jax: 0.10.0
libtpu: 0.0.40
codegen_flags: <defaults>
</compile_context>

<pallas_src>
import functools

import jax
import jax.numpy as jnp
from jax import lax
from jax.experimental import pallas as pl
from jax.experimental.pallas import tpu as pltpu


def _round_up(v, m):
    return (v + m - 1) // m * m


def _pick_batch_tile(n, hw, min_lanes=1024):
    """Smallest divisor of n whose lane width (d*hw) reaches min_lanes; else n.

    Keeps per-step lane width large enough to amortise the fixed grid-step overhead
    while leaving >= 2 parallel grid steps (v7x: both TensorCores busy) whenever the
    batch allows it."""
    for d in range(1, n + 1):
        if n % d == 0 and d * hw >= min_lanes:
            return d
    return n


def _basic_block_kernel(x_ref, w1_ref, b1_ref, w2_ref, b2_ref, out_ref, *, H, W):
    """One batch tile (batch fused into lanes) per grid step.

    x_ref  : (Cp, LT)    activations, LT = batch_tile*H*W lanes (also the residual)
    w1_ref : (Cp, 9*Cp)  conv1 weight, im2col layout, BN1 scale folded, zero-padded
    b1_ref : (Cp, 1)     BN1 folded bias (zero-padded)
    w2_ref : (Cp, 9*Cp)  conv2 weight, BN2 scale folded, zero-padded
    b2_ref : (Cp, 1)     BN2 folded bias (zero-padded)
    out_ref: (Cp, LT)
    """
    LT = x_ref.shape[1]
    HW = H * W
    x = x_ref[...]                                     # (Cp, LT), also the residual

    # ---- Halo masks for a 3x3 / pad=1 conv, computed ONCE and shared by both convs.
    #      Row index is per-image (pos mod HW) so taps never leak across the fused
    #      image boundaries in the lane axis. ----
    pos = lax.broadcasted_iota(jnp.int32, (1, LT), 1)  # fused lane index
    rowpos = (pos & (HW - 1)) if (HW & (HW - 1)) == 0 else (pos % HW)   # h*W + w
    col = (rowpos & (W - 1)) if (W & (W - 1)) == 0 else (rowpos % W)    # w
    top_ok = rowpos >= W                               # h >= 1
    bot_ok = rowpos < (H - 1) * W                      # h <= H-2
    left_ok = col >= 1                                 # w >= 1
    right_ok = col <= W - 2                            # w <= W-2

    taps = []                                          # (lane shift, combined mask)
    for dh in (-1, 0, 1):
        for dw in (-1, 0, 1):
            s = dh * W + dw
            m = None
            if dh == -1:
                m = top_ok
            elif dh == 1:
                m = bot_ok
            if dw == -1:
                m = left_ok if m is None else jnp.logical_and(m, left_ok)
            elif dw == 1:
                m = right_ok if m is None else jnp.logical_and(m, right_ok)
            taps.append((s, m))

    def im2col(a):
        """(Cp, LT) -> (9*Cp, LT) patch built as a value (no scratch round trip).

        Taps come from XLU lane rotates (free slot) + cheap VPU selects; operands are
        8-sublane aligned so the concatenate is tile-aligned."""
        rows = []
        for s, m in taps:
            v = a if s == 0 else pltpu.roll(a, (-s) % LT, axis=1)
            if m is not None:
                v = jnp.where(m, v, 0.0)
            rows.append(v)
        return jnp.concatenate(rows, axis=0)

    # ---- conv1 (3x3, pad=1) + BN1 (scale folded into w1) + ReLU: one MXU matmul ----
    y = jnp.dot(w1_ref[...], im2col(x), preferred_element_type=jnp.float32)
    y = jnp.maximum(y + b1_ref[...], 0.0)              # (Cp, LT)

    # ---- conv2 (3x3, pad=1) + BN2 + residual add + ReLU: one MXU matmul ----
    z = jnp.dot(w2_ref[...], im2col(y), preferred_element_type=jnp.float32)
    out_ref[...] = jnp.maximum(z + b2_ref[...] + x, 0.0)


def basic_block_forward(x, w1, s1, b1, w2, s2, b2, *, batch_tile=None):
    """x: (N, C, H, W) float32 (NCHW, as in the PyTorch module).
    w1, w2: (3, 3, Cin, Cout) HWIO.  s*, b*: (Cout,) folded BN scale/bias.
    Returns (N, Cout, H, W)."""
    N, C, H, W = x.shape
    Cout = w1.shape[-1]
    assert w1.shape == (3, 3, C, Cout) and w2.shape == (3, 3, Cout, Cout)
    # Residual add requires Cin == Cout (true whenever downsample is None, stride==1).
    assert Cout == C, "BasicBlock without downsample requires Cin == Cout"
    HW = H * W

    # Pad channels to the f32 sublane tile so every tap / store / concat is aligned.
    Cp = max(8, _round_up(C, 8))

    # ---- Host-side prep (pure layout / constant folding, negligible cost) ----
    # Fold the batch into the lane axis: channel-major, lane-dense (Cp, N*H*W).
    xf = jnp.transpose(x.reshape(N, C, HW), (1, 0, 2)).reshape(C, N * HW)
    xf = jnp.pad(xf, ((0, Cp - C), (0, 0)))

    def prep_w(w, s, b):
        w = w * s                                                  # fold BN scale
        w = jnp.pad(w, ((0, 0), (0, 0), (0, Cp - C), (0, Cp - Cout)))   # (3,3,Cp,Cp)
        wm = jnp.transpose(w.reshape(9 * Cp, Cp))                  # (Cp, 9*Cp)
        bm = jnp.pad(b, (0, Cp - Cout)).reshape(Cp, 1)
        return wm, bm

    w1m, b1c = prep_w(w1, s1, b1)
    w2m, b2c = prep_w(w2, s2, b2)

    # ---- Batch tiling: big lane tiles, >= 2 parallel steps when batch allows ----
    if batch_tile is None:
        batch_tile = _pick_batch_tile(N, HW)
    assert N % batch_tile == 0
    LT = batch_tile * HW
    if LT % 128 != 0 and batch_tile != N:
        batch_tile, LT = N, N * HW     # block must be 128-multiple or the full dim
    grid = (N // batch_tile,)

    kernel = functools.partial(_basic_block_kernel, H=H, W=W)
    out = pl.pallas_call(
        kernel,
        out_shape=jax.ShapeDtypeStruct((Cp, N * HW), jnp.float32),
        grid_spec=pltpu.PrefetchScalarGridSpec(
            num_scalar_prefetch=0,
            grid=grid,
            in_specs=[
                pl.BlockSpec((Cp, LT), lambda i: (0, i)),          # x (+ residual)
                pl.BlockSpec((Cp, 9 * Cp), lambda i: (0, 0)),      # w1 (invariant)
                pl.BlockSpec((Cp, 1), lambda i: (0, 0)),           # b1
                pl.BlockSpec((Cp, 9 * Cp), lambda i: (0, 0)),      # w2
                pl.BlockSpec((Cp, 1), lambda i: (0, 0)),           # b2
            ],
            out_specs=pl.BlockSpec((Cp, LT), lambda i: (0, i)),
        ),
        compiler_params=pltpu.CompilerParams(
            dimension_semantics=("parallel",)),   # batch tiles independent -> megacore
    )(xf, w1m, b1c, w2m, b2c)

    # Back to NCHW, dropping the zero channel padding.
    out = out.reshape(Cp, N, HW).transpose(1, 0, 2)[:, :C].reshape(N, C, H, W)
    return out


def _fold_bn(gamma, beta, mean, var, eps=1e-5):
    scale = gamma / jnp.sqrt(var + eps)
    return scale, beta - mean * scale


def _reference_forward(x, w1, s1, b1, w2, s2, b2):
    """Pure-JAX reference (NCHW activations / HWIO weights)."""
    dn = ("NCHW", "HWIO", "NCHW")
    conv = functools.partial(lax.conv_general_dilated,
                             window_strides=(1, 1), padding="SAME",
                             dimension_numbers=dn)
    sb = lambda v: v.reshape(1, -1, 1, 1)
    y = jnp.maximum(conv(x, w1) * sb(s1) + sb(b1), 0.0)
    z = conv(y, w2) * sb(s2) + sb(b2)
    return jnp.maximum(z + x, 0.0)


if __name__ == "__main__":
    # BasicBlock(inplanes=4, planes=4, stride=1, downsample=None)
    N, C, H, W = 2, 4, 16, 16

    key = jax.random.PRNGKey(0)
    ks = jax.random.split(key, 12)

    x = jax.random.normal(ks[0], (N, C, H, W), jnp.float32)

    w1 = 0.1 * jax.random.normal(ks[1], (3, 3, C, C), jnp.float32)
    w2 = 0.1 * jax.random.normal(ks[2], (3, 3, C, C), jnp.float32)

    g1 = 1.0 + 0.1 * jax.random.normal(ks[3], (C,), jnp.float32)
    be1 = 0.1 * jax.random.normal(ks[4], (C,), jnp.float32)
    m1 = 0.1 * jax.random.normal(ks[5], (C,), jnp.float32)
    v1 = jax.random.uniform(ks[6], (C,), jnp.float32, 0.5, 1.5)

    g2 = 1.0 + 0.1 * jax.random.normal(ks[7], (C,), jnp.float32)
    be2 = 0.1 * jax.random.normal(ks[8], (C,), jnp.float32)
    m2 = 0.1 * jax.random.normal(ks[9], (C,), jnp.float32)
    v2 = jax.random.uniform(ks[10], (C,), jnp.float32, 0.5, 1.5)

    s1, b1 = _fold_bn(g1, be1, m1, v1)
    s2, b2 = _fold_bn(g2, be2, m2, v2)

    out = basic_block_forward(x, w1, s1, b1, w2, s2, b2)
    out = jax.block_until_ready(out)

    ref = _reference_forward(x, w1, s1, b1, w2, s2, b2)
    assert out.shape == (N, C, H, W)
    assert jnp.max(jnp.abs(out - ref)) < 1e-4, "mismatch vs JAX reference"

    print("KERNEL_OK")
</pallas_src>

<mosaic_0001>
module attributes {stable_mosaic.version = 11 : i64} {
  func.func @_basic_block_kernel(%arg0: i32, %arg1: memref<8x512xf32, #tpu.memory_space<vmem>>, %arg2: memref<8x72xf32, #tpu.memory_space<vmem>>, %arg3: memref<8x1xf32, #tpu.memory_space<vmem>>, %arg4: memref<8x72xf32, #tpu.memory_space<vmem>>, %arg5: memref<8x1xf32, #tpu.memory_space<vmem>>, %arg6: memref<8x512xf32, #tpu.memory_space<vmem>>) attributes {dimension_semantics = [#tpu.dimension_semantics<parallel>], iteration_bounds = array<i64: 1>, scalar_prefetch = 0 : i64, scratch_operands = 0 : i64, tpu.core_type = #tpu.core_type<tc>, window_params = [{transform_indices = @transform_0, window_bounds = array<i64: 8, 512>}, {pipeline_mode = #tpu.pipeline_mode<synchronous>, transform_indices = @transform_1, window_bounds = array<i64: 8, 72>}, {pipeline_mode = #tpu.pipeline_mode<synchronous>, transform_indices = @transform_2, window_bounds = array<i64: 8, 1>}, {pipeline_mode = #tpu.pipeline_mode<synchronous>, transform_indices = @transform_3, window_bounds = array<i64: 8, 72>}, {pipeline_mode = #tpu.pipeline_mode<synchronous>, transform_indices = @transform_4, window_bounds = array<i64: 8, 1>}, {transform_indices = @transform_5, window_bounds = array<i64: 8, 512>}]} {
    %c0 = arith.constant 0 : index
    %c0_0 = arith.constant 0 : index
    %0 = vector.load %arg1[%c0, %c0_0] : memref<8x512xf32, #tpu.memory_space<vmem>>, vector<8x512xf32>
    %1 = tpu.iota {dimensions = array<i32: 1>} : vector<1x512xi32>
    %c255_i32 = arith.constant 255 : i32
    %2 = vector.broadcast %c255_i32 : i32 to vector<1x512xi32>
    %3 = arith.andi %1, %2 : vector<1x512xi32>
    %c15_i32 = arith.constant 15 : i32
    %4 = vector.broadcast %c15_i32 : i32 to vector<1x512xi32>
    %5 = arith.andi %3, %4 : vector<1x512xi32>
    %c16_i32 = arith.constant 16 : i32
    %6 = vector.broadcast %c16_i32 : i32 to vector<1x512xi32>
    %7 = arith.cmpi sge, %3, %6 : vector<1x512xi32>
    %c240_i32 = arith.constant 240 : i32
    %8 = vector.broadcast %c240_i32 : i32 to vector<1x512xi32>
    %9 = arith.cmpi slt, %3, %8 : vector<1x512xi32>
    %c1_i32 = arith.constant 1 : i32
    %10 = vector.broadcast %c1_i32 : i32 to vector<1x512xi32>
    %11 = arith.cmpi sge, %5, %10 : vector<1x512xi32>
    %c14_i32 = arith.constant 14 : i32
    %12 = vector.broadcast %c14_i32 : i32 to vector<1x512xi32>
    %13 = arith.cmpi sle, %5, %12 : vector<1x512xi32>
    %14 = arith.andi %7, %11 : vector<1x512xi1>
    %15 = arith.andi %7, %13 : vector<1x512xi1>
    %16 = arith.andi %9, %11 : vector<1x512xi1>
    %17 = arith.andi %9, %13 : vector<1x512xi1>
    %c0_1 = arith.constant 0 : index
    %c0_2 = arith.constant 0 : index
    %18 = vector.load %arg2[%c0_1, %c0_2] : memref<8x72xf32, #tpu.memory_space<vmem>>, vector<8x72xf32>
    %c17_i32 = arith.constant 17 : i32
    %19 = tpu.dynamic_rotate %0 by %c17_i32 dim 1 : vector<8x512xf32>, i32 -> vector<8x512xf32>
    %cst = arith.constant 0.000000e+00 : f32
    %20 = vector.shape_cast %14 : vector<1x512xi1> to vector<1x512xi1>
    %21 = vector.broadcast %20 : vector<1x512xi1> to vector<8x512xi1>
    %22 = vector.broadcast %cst : f32 to vector<8x512xf32>
    %23 = arith.select %21, %19, %22 : vector<8x512xi1>, vector<8x512xf32>
    %c16_i32_3 = arith.constant 16 : i32
    %24 = tpu.dynamic_rotate %0 by %c16_i32_3 dim 1 : vector<8x512xf32>, i32 -> vector<8x512xf32>
    %cst_4 = arith.constant 0.000000e+00 : f32
    %25 = vector.shape_cast %7 : vector<1x512xi1> to vector<1x512xi1>
    %26 = vector.broadcast %25 : vector<1x512xi1> to vector<8x512xi1>
    %27 = vector.broadcast %cst_4 : f32 to vector<8x512xf32>
    %28 = arith.select %26, %24, %27 : vector<8x512xi1>, vector<8x512xf32>
    %c15_i32_5 = arith.constant 15 : i32
    %29 = tpu.dynamic_rotate %0 by %c15_i32_5 dim 1 : vector<8x512xf32>, i32 -> vector<8x512xf32>
    %cst_6 = arith.constant 0.000000e+00 : f32
    %30 = vector.shape_cast %15 : vector<1x512xi1> to vector<1x512xi1>
    %31 = vector.broadcast %30 : vector<1x512xi1> to vector<8x512xi1>
    %32 = vector.broadcast %cst_6 : f32 to vector<8x512xf32>
    %33 = arith.select %31, %29, %32 : vector<8x512xi1>, vector<8x512xf32>
    %c1_i32_7 = arith.constant 1 : i32
    %34 = tpu.dynamic_rotate %0 by %c1_i32_7 dim 1 : vector<8x512xf32>, i32 -> vector<8x512xf32>
    %cst_8 = arith.constant 0.000000e+00 : f32
    %35 = vector.shape_cast %11 : vector<1x512xi1> to vector<1x512xi1>
    %36 = vector.broadcast %35 : vector<1x512xi1> to vector<8x512xi1>
    %37 = vector.broadcast %cst_8 : f32 to vector<8x512xf32>
    %38 = arith.select %36, %34, %37 : vector<8x512xi1>, vector<8x512xf32>
    %c511_i32 = arith.constant 511 : i32
    %39 = tpu.dynamic_rotate %0 by %c511_i32 dim 1 : vector<8x512xf32>, i32 -> vector<8x512xf32>
    %cst_9 = arith.constant 0.000000e+00 : f32
    %40 = vector.shape_cast %13 : vector<1x512xi1> to vector<1x512xi1>
    %41 = vector.broadcast %40 : vector<1x512xi1> to vector<8x512xi1>
    %42 = vector.broadcast %cst_9 : f32 to vector<8x512xf32>
    %43 = arith.select %41, %39, %42 : vector<8x512xi1>, vector<8x512xf32>
    %c497_i32 = arith.constant 497 : i32
    %44 = tpu.dynamic_rotate %0 by %c497_i32 dim 1 : vector<8x512xf32>, i32 -> vector<8x512xf32>
    %cst_10 = arith.constant 0.000000e+00 : f32
    %45 = vector.shape_cast %16 : vector<1x512xi1> to vector<1x512xi1>
    %46 = vector.broadcast %45 : vector<1x512xi1> to vector<8x512xi1>
    %47 = vector.broadcast %cst_10 : f32 to vector<8x512xf32>
    %48 = arith.select %46, %44, %47 : vector<8x512xi1>, vector<8x512xf32>
    %c496_i32 = arith.constant 496 : i32
    %49 = tpu.dynamic_rotate %0 by %c496_i32 dim 1 : vector<8x512xf32>, i32 -> vector<8x512xf32>
    %cst_11 = arith.constant 0.000000e+00 : f32
    %50 = vector.shape_cast %9 : vector<1x512xi1> to vector<1x512xi1>
    %51 = vector.broadcast %50 : vector<1x512xi1> to vector<8x512xi1>
    %52 = vector.broadcast %cst_11 : f32 to vector<8x512xf32>
    %53 = arith.select %51, %49, %52 : vector<8x512xi1>, vector<8x512xf32>
    %c495_i32 = arith.constant 495 : i32
    %54 = tpu.dynamic_rotate %0 by %c495_i32 dim 1 : vector<8x512xf32>, i32 -> vector<8x512xf32>
    %cst_12 = arith.constant 0.000000e+00 : f32
    %55 = vector.shape_cast %17 : vector<1x512xi1> to vector<1x512xi1>
    %56 = vector.broadcast %55 : vector<1x512xi1> to vector<8x512xi1>
    %57 = vector.broadcast %cst_12 : f32 to vector<8x512xf32>
    %58 = arith.select %56, %54, %57 : vector<8x512xi1>, vector<8x512xf32>
    %59 = tpu.concatenate %23, %28, %33, %38, %0, %43, %48, %53, %58 in 0 : vector<8x512xf32>, vector<8x512xf32>, vector<8x512xf32>, vector<8x512xf32>, vector<8x512xf32>, vector<8x512xf32>, vector<8x512xf32>, vector<8x512xf32>, vector<8x512xf32> -> vector<72x512xf32>
    %cst_13 = arith.constant dense<0.000000e+00> : vector<8x512xf32>
    %60 = tpu.matmul %18, %59, %cst_13 {dimension_numbers = #tpu.dot_dimension_numbers<[1], [0], [0], [1], [0, 0, 1, 1], [], []>} : vector<8x72xf32>, vector<72x512xf32>, vector<8x512xf32> -> vector<8x512xf32>
    %c0_14 = arith.constant 0 : index
    %c0_15 = arith.constant 0 : index
    %61 = vector.load %arg3[%c0_14, %c0_15] : memref<8x1xf32, #tpu.memory_space<vmem>>, vector<8x1xf32>
    %62 = vector.broadcast %61 : vector<8x1xf32> to vector<8x512xf32>
    %63 = arith.addf %60, %62 : vector<8x512xf32>
    %cst_16 = arith.constant 0.000000e+00 : f32
    %64 = vector.broadcast %cst_16 : f32 to vector<8x512xf32>
    %65 = arith.maximumf %63, %64 : vector<8x512xf32>
    %c0_17 = arith.constant 0 : index
    %c0_18 = arith.constant 0 : index
    %66 = vector.load %arg4[%c0_17, %c0_18] : memref<8x72xf32, #tpu.memory_space<vmem>>, vector<8x72xf32>
    %c17_i32_19 = arith.constant 17 : i32
    %67 = tpu.dynamic_rotate %65 by %c17_i32_19 dim 1 : vector<8x512xf32>, i32 -> vector<8x512xf32>
    %cst_20 = arith.constant 0.000000e+00 : f32
    %68 = vector.shape_cast %14 : vector<1x512xi1> to vector<1x512xi1>
    %69 = vector.broadcast %68 : vector<1x512xi1> to vector<8x512xi1>
    %70 = vector.broadcast %cst_20 : f32 to vector<8x512xf32>
    %71 = arith.select %69, %67, %70 : vector<8x512xi1>, vector<8x512xf32>
    %c16_i32_21 = arith.constant 16 : i32
    %72 = tpu.dynamic_rotate %65 by %c16_i32_21 dim 1 : vector<8x512xf32>, i32 -> vector<8x512xf32>
    %cst_22 = arith.constant 0.000000e+00 : f32
    %73 = vector.shape_cast %7 : vector<1x512xi1> to vector<1x512xi1>
    %74 = vector.broadcast %73 : vector<1x512xi1> to vector<8x512xi1>
    %75 = vector.broadcast %cst_22 : f32 to vector<8x512xf32>
    %76 = arith.select %74, %72, %75 : vector<8x512xi1>, vector<8x512xf32>
    %c15_i32_23 = arith.constant 15 : i32
    %77 = tpu.dynamic_rotate %65 by %c15_i32_23 dim 1 : vector<8x512xf32>, i32 -> vector<8x512xf32>
    %cst_24 = arith.constant 0.000000e+00 : f32
    %78 = vector.shape_cast %15 : vector<1x512xi1> to vector<1x512xi1>
    %79 = vector.broadcast %78 : vector<1x512xi1> to vector<8x512xi1>
    %80 = vector.broadcast %cst_24 : f32 to vector<8x512xf32>
    %81 = arith.select %79, %77, %80 : vector<8x512xi1>, vector<8x512xf32>
    %c1_i32_25 = arith.constant 1 : i32
    %82 = tpu.dynamic_rotate %65 by %c1_i32_25 dim 1 : vector<8x512xf32>, i32 -> vector<8x512xf32>
    %cst_26 = arith.constant 0.000000e+00 : f32
    %83 = vector.shape_cast %11 : vector<1x512xi1> to vector<1x512xi1>
    %84 = vector.broadcast %83 : vector<1x512xi1> to vector<8x512xi1>
    %85 = vector.broadcast %cst_26 : f32 to vector<8x512xf32>
    %86 = arith.select %84, %82, %85 : vector<8x512xi1>, vector<8x512xf32>
    %c511_i32_27 = arith.constant 511 : i32
    %87 = tpu.dynamic_rotate %65 by %c511_i32_27 dim 1 : vector<8x512xf32>, i32 -> vector<8x512xf32>
    %cst_28 = arith.constant 0.000000e+00 : f32
    %88 = vector.shape_cast %13 : vector<1x512xi1> to vector<1x512xi1>
    %89 = vector.broadcast %88 : vector<1x512xi1> to vector<8x512xi1>
    %90 = vector.broadcast %cst_28 : f32 to vector<8x512xf32>
    %91 = arith.select %89, %87, %90 : vector<8x512xi1>, vector<8x512xf32>
    %c497_i32_29 = arith.constant 497 : i32
    %92 = tpu.dynamic_rotate %65 by %c497_i32_29 dim 1 : vector<8x512xf32>, i32 -> vector<8x512xf32>
    %cst_30 = arith.constant 0.000000e+00 : f32
    %93 = vector.shape_cast %16 : vector<1x512xi1> to vector<1x512xi1>
    %94 = vector.broadcast %93 : vector<1x512xi1> to vector<8x512xi1>
    %95 = vector.broadcast %cst_30 : f32 to vector<8x512xf32>
    %96 = arith.select %94, %92, %95 : vector<8x512xi1>, vector<8x512xf32>
    %c496_i32_31 = arith.constant 496 : i32
    %97 = tpu.dynamic_rotate %65 by %c496_i32_31 dim 1 : vector<8x512xf32>, i32 -> vector<8x512xf32>
    %cst_32 = arith.constant 0.000000e+00 : f32
    %98 = vector.shape_cast %9 : vector<1x512xi1> to vector<1x512xi1>
    %99 = vector.broadcast %98 : vector<1x512xi1> to vector<8x512xi1>
    %100 = vector.broadcast %cst_32 : f32 to vector<8x512xf32>
    %101 = arith.select %99, %97, %100 : vector<8x512xi1>, vector<8x512xf32>
    %c495_i32_33 = arith.constant 495 : i32
    %102 = tpu.dynamic_rotate %65 by %c495_i32_33 dim 1 : vector<8x512xf32>, i32 -> vector<8x512xf32>
    %cst_34 = arith.constant 0.000000e+00 : f32
    %103 = vector.shape_cast %17 : vector<1x512xi1> to vector<1x512xi1>
    %104 = vector.broadcast %103 : vector<1x512xi1> to vector<8x512xi1>
    %105 = vector.broadcast %cst_34 : f32 to vector<8x512xf32>
    %106 = arith.select %104, %102, %105 : vector<8x512xi1>, vector<8x512xf32>
    %107 = tpu.concatenate %71, %76, %81, %86, %65, %91, %96, %101, %106 in 0 : vector<8x512xf32>, vector<8x512xf32>, vector<8x512xf32>, vector<8x512xf32>, vector<8x512xf32>, vector<8x512xf32>, vector<8x512xf32>, vector<8x512xf32>, vector<8x512xf32> -> vector<72x512xf32>
    %cst_35 = arith.constant dense<0.000000e+00> : vector<8x512xf32>
    %108 = tpu.matmul %66, %107, %cst_35 {dimension_numbers = #tpu.dot_dimension_numbers<[1], [0], [0], [1], [0, 0, 1, 1], [], []>} : vector<8x72xf32>, vector<72x512xf32>, vector<8x512xf32> -> vector<8x512xf32>
    %c0_36 = arith.constant 0 : index
    %c0_37 = arith.constant 0 : index
    %109 = vector.load %arg5[%c0_36, %c0_37] : memref<8x1xf32, #tpu.memory_space<vmem>>, vector<8x1xf32>
    %110 = vector.broadcast %109 : vector<8x1xf32> to vector<8x512xf32>
    %111 = arith.addf %108, %110 : vector<8x512xf32>
    %112 = arith.addf %111, %0 : vector<8x512xf32>
    %cst_38 = arith.constant 0.000000e+00 : f32
    %113 = vector.broadcast %cst_38 : f32 to vector<8x512xf32>
    %114 = arith.maximumf %112, %113 : vector<8x512xf32>
    %c0_39 = arith.constant 0 : index
    %c0_40 = arith.constant 0 : index
    %115 = vector.load %arg6[%c0_39, %c0_40] : memref<8x512xf32, #tpu.memory_space<vmem>>, vector<8x512xf32>
    tpu.vector_store %arg6[%c0_39, %c0_40], %114 {strides = array<i32>} : memref<8x512xf32, #tpu.memory_space<vmem>>, vector<8x512xf32>,
    return
  }
  func.func @transform_0(%arg0: i32) -> (i32, i32) {
    %c0_i32 = arith.constant 0 : i32
    %c0_i32_0 = arith.constant 0 : i32
    return %c0_i32, %arg0 : i32, i32
  }
  func.func @transform_1(%arg0: i32) -> (i32, i32) {
    %c0_i32 = arith.constant 0 : i32
    %c0_i32_0 = arith.constant 0 : i32
    %c0_i32_1 = arith.constant 0 : i32
    return %c0_i32, %c0_i32_0 : i32, i32
  }
  func.func @transform_2(%arg0: i32) -> (i32, i32) {
    %c0_i32 = arith.constant 0 : i32
    %c0_i32_0 = arith.constant 0 : i32
    %c0_i32_1 = arith.constant 0 : i32
    return %c0_i32, %c0_i32_0 : i32, i32
  }
  func.func @transform_3(%arg0: i32) -> (i32, i32) {
    %c0_i32 = arith.constant 0 : i32
    %c0_i32_0 = arith.constant 0 : i32
    %c0_i32_1 = arith.constant 0 : i32
    return %c0_i32, %c0_i32_0 : i32, i32
  }
  func.func @transform_4(%arg0: i32) -> (i32, i32) {
    %c0_i32 = arith.constant 0 : i32
    %c0_i32_0 = arith.constant 0 : i32
    %c0_i32_1 = arith.constant 0 : i32
    return %c0_i32, %c0_i32_0 : i32, i32
  }
  func.func @transform_5(%arg0: i32) -> (i32, i32) {
    %c0_i32 = arith.constant 0 : i32
    %c0_i32_0 = arith.constant 0 : i32
    return %c0_i32, %arg0 : i32, i32
  }
}

</mosaic_0001>

<bundles_post_ra>
// kernel: tpu_custom_call.1
= control target key start
LH: loop header
LB: loop body
LE: loop exit
PB: predicated region body
PF: predicated region fallthrough
CT: control target
= control target key end

     0   :  { %10 = vsyncpa [#allocation3], 0  ;;  %s1448_s0 = inlined_call_operand.hbm [shape: f32[8,512], index: 0, kind: input, shape index: {}]   ;;  %s1449_s1 = inlined_call_operand.vmem [shape: f32[8,72], index: 1, kind: input, shape index: {}]   ;;  %s1450_s2 = inlined_call_operand.vmem [shape: f32[8,1], index: 2, kind: input, shape index: {}]   ;;  %s1451_s3 = inlined_call_operand.vmem [shape: f32[8,72], index: 3, kind: input, shape index: {}]   ;;  %s1452_s4 = inlined_call_operand.vmem [shape: f32[8,1], index: 4, kind: input, shape index: {}]   ;;  %s1453_s5 = inlined_call_operand.hbm [shape: f32[8,512], index: 5, kind: output, shape index: {}]  }
   0x1   :  { %11 = vsyncpa [#allocation4], 0  ;;  %s863_s18 = smov [#allocation2]  }
   0x2   :  { %s18_s19 = sshll.u32 %s863_s18, 4  ;;  %s19_s19 = int_to_ptr.vmem [resolvable:$true] %s18_s19 }
   0x3   :  { %s827_s20 = scalar_lea.vmem %s19_s19, 512  ;;  %p832_p1 = scmp.lt.s32.totalorder %s19_s19, %s19_s19 }
   0x4   :  { %p828_p0 = scmp.ne.s32.totalorder %s19_s19, %s827_s20  ;;  %p833_p2 = scmp.lt.s32.totalorder %s827_s20, %s827_s20 }
   0x6   :  { %p834_p3 = por %p833_p2, %p832_p1 }
   0x8   :  { %p835_p4 = pnand %p834_p3, %p828_p0 }
   0xa   :  { %838 = shalt.err (!%p835_p4)
}
   0xb   :  { %21 = dma.hbm_to_vmem [thread:$0]  %s1448_s0, 512, %s19_s19, [#allocation3]  }
   0xc   :  { %859 = dma.done.wait [#allocation3], 512  }
   0xd   :  { %860 = vsyncadd [#allocation3], 4294966784  ;;  %v908_v0 = vld [vmem:[#allocation2 + $0x10] sm:$0xff]  ;;  %v910_v1 = vld [vmem:[#allocation2] sm:$0xff]  ;;  %s864_s23 = smov 111   ;;  %s865_s0 = smov 112   ;;  %v37_v7 = vlaneseq }
   0xe   :  { %262 = vrot.lane.b32.xlu1 %v908_v0, %s864_s23  ;;  %258 = vrot.lane.b32.xlu0 %v910_v1, %s864_s23  ;;  %v916_v2 = vld [vmem:[#allocation2 + $0x18] sm:$0xff]  ;;  %v918_v3 = vld [vmem:[#allocation2 + $0x8] sm:$0xff]  ;;  %s866_s24 = smov 113   ;;  %s867_s25 = smov 127   ;;  %v871_v4 = vmov 0.0   ;;  %v872_v5 = vmov 0  }
   0xf   :  { %s868_s26 = smov 1   ;;  %s869_s27 = smov 15   ;;  %357 = vmatprep.mubr.f32.mxu0 %v871_v4  ;;  %428 = vmatprep.mubr.f32.mxu1 %v871_v4  ;;  %v283_v6 = vld [vmem:[%s1450_s2] sm:$0xff]  ;;  %v985_v8 = vand.u32 127, %v37_v7 }
  0x10   :  { %s870_s28 = smov 16   ;;  %818 = vset.pattern.permute.xlu0 %v872_v5  ;;  %s873_s29 = smov 17  }
  0x11   :  { %v39_v9 = vadd.s32 128, %v985_v8  ;;  %v41_v10 = vadd.s32 384, %v985_v8  ;;  %v990_v13 = vadd.s32 256, %v985_v8  ;;  %v42_v16 = vand.u32 255, %v985_v8 }
  0x12   :  { %264 = vrot.lane.b32.xlu1 %v916_v2, %s864_s23  ;;  %260 = vrot.lane.b32.xlu0 %v918_v3, %s864_s23  ;;  %vm1455_vm5 = vcmp.lt.s32.totalorder %v985_v8, 111  ;;  %vm1454_vm9 = vcmp.lt.s32.totalorder %v985_v8, 112  ;;  %vm1456_vm13 = vcmp.lt.s32.totalorder %v985_v8, 113 }
  0x13   :  { %v43_v11 = vand.u32 255, %v39_v9  ;;  %v45_v12 = vand.u32 255, %v41_v10  ;;  %v44_v17 = vand.u32 255, %v990_v13  ;;  %v1010_v22 = vand.u32 15, %v42_v16 }
  0x15   :  { %v992_v14 = vand.u32 15, %v43_v11  ;;  %v994_v15 = vand.u32 15, %v45_v12  ;;  %vm998_vm0 = vcmp.lt.s32.totalorder %v43_v11, 240  ;;  %vm1003_vm2 = vcmp.lt.s32.totalorder %v45_v12, 240 }
  0x16   :  { %235 = vrot.lane.b32.xlu1 %v918_v3, %s865_s0  ;;  %233 = vrot.lane.b32.xlu0 %v910_v1, %s865_s0  ;;  %v1014_v23 = vand.u32 15, %v44_v17  ;;  %vm1467_vm7 = vcmp.le.s32.totalorder %v1010_v22, 14  ;;  %vm1468_vm15 = vcmp.ge.s32.totalorder %v1010_v22, 1 }
  0x17   :  { %vm1462_vm1 = vcmp.le.s32.totalorder %v992_v14, 14  ;;  %vm1464_vm3 = vcmp.le.s32.totalorder %v994_v15, 14  ;;  %vm1458_vm10 = vcmp.ge.s32.totalorder %v992_v14, 1  ;;  %vm1460_vm11 = vcmp.ge.s32.totalorder %v994_v15, 1 }
  0x18   :  { %vm1020_vm4 = vmand %vm998_vm0, %vm1462_vm1  ;;  %vm1466_vm8 = vcmp.le.s32.totalorder %v1014_v23, 14 }
  0x19   :  { %vm1029_vm6 = vmand %vm1003_vm2, %vm1464_vm3 }
  0x1a   :  { %239 = vrot.lane.b32.xlu1 %v916_v2, %s865_s0  ;;  %237 = vrot.lane.b32.xlu0 %v908_v0, %s865_s0  ;;  %vm1070_vm12 = vmand %vm998_vm0, %vm1458_vm10 }
  0x1b   :  { %vm1079_vm14 = vmand %vm1003_vm2, %vm1460_vm11 }
  0x1e   :  { %210 = vrot.lane.b32.xlu1 %v918_v3, %s866_s24  ;;  %208 = vrot.lane.b32.xlu0 %v910_v1, %s866_s24 }
  0x22   :  { %214 = vrot.lane.b32.xlu1 %v916_v2, %s866_s24  ;;  %212 = vrot.lane.b32.xlu0 %v908_v0, %s866_s24 }
  0x26   :  { %185 = vrot.lane.b32.xlu1 %v918_v3, %s867_s25  ;;  %183 = vrot.lane.b32.xlu0 %v910_v1, %s867_s25 }
  0x2a   :  { %189 = vrot.lane.b32.xlu1 %v916_v2, %s867_s25  ;;  %187 = vrot.lane.b32.xlu0 %v908_v0, %s867_s25 }
  0x2e   :  { %160 = vrot.lane.b32.xlu1 %v918_v3, %s868_s26  ;;  %158 = vrot.lane.b32.xlu0 %v910_v1, %s868_s26 }
  0x32   :  { %164 = vrot.lane.b32.xlu1 %v916_v2, %s868_s26  ;;  %162 = vrot.lane.b32.xlu0 %v908_v0, %s868_s26 }
  0x36   :  { %135 = vrot.lane.b32.xlu1 %v918_v3, %s869_s27  ;;  %133 = vrot.lane.b32.xlu0 %v910_v1, %s869_s27 }
  0x3a   :  { %139 = vrot.lane.b32.xlu1 %v916_v2, %s869_s27  ;;  %137 = vrot.lane.b32.xlu0 %v908_v0, %s869_s27 }
  0x3e   :  { %110 = vrot.lane.b32.xlu1 %v918_v3, %s870_s28  ;;  %108 = vrot.lane.b32.xlu0 %v910_v1, %s870_s28 }
  0x42   :  { %114 = vrot.lane.b32.xlu1 %v916_v2, %s870_s28  ;;  %112 = vrot.lane.b32.xlu0 %v908_v0, %s870_s28 }
  0x46   :  { %85 = vrot.lane.b32.xlu1 %v918_v3, %s873_s29  ;;  %83 = vrot.lane.b32.xlu0 %v910_v1, %s873_s29 }
  0x4a   :  { %89 = vrot.lane.b32.xlu1 %v916_v2, %s873_s29  ;;  %87 = vrot.lane.b32.xlu0 %v908_v0, %s873_s29 }
  0x4e   :  { %286 = vperm.xlu0 %818, %v283_v6  }
  0x80   :  { %v263_v19 = vpop.permute.xlu1 %262  ;;  %v259_v20 = vpop.permute.xlu0 %258 }
  0x84   :  { %v265_v26 = vpop.permute.xlu1 %264  ;;  %v261_v27 = vpop.permute.xlu0 %260 }
  0x85   :  { %v268_v28 = vsel %vm1455_vm5, %v261_v27, %v263_v19  ;;  %v270_v29 = vsel %vm1455_vm5, %v265_v26, %v259_v20  ;;  %v269_v30 = vsel %vm1455_vm5, %v259_v20, %v261_v27  ;;  %v267_v31 = vsel %vm1455_vm5, %v263_v19, %v265_v26 }
  0x86   :  { %746 = vmatprep.subr.msk.mxu0 %vm1020_vm4, %v268_v28  ;;  %761 = vmatprep.subr.msk.mxu1 %vm1029_vm6, %v270_v29  ;;  %vm1457_vm5 = vcmp.lt.s32.totalorder %v985_v8, 127 }
  0x87   :  { %747 = vmatpush1.msk.msra.mxu0 %vm1467_vm7, %v269_v30  ;;  %762 = vmatpush1.msk.msra.mxu1 %vm1466_vm8, %v267_v31 }
  0x88   :  { %v236_v32 = vpop.permute.xlu1 %235  ;;  %v234_v33 = vpop.permute.xlu0 %233 }
  0x89   :  { %v244_v39 = vsel %vm1454_vm9, %v234_v33, %v236_v32 }
  0x8c   :  { %v240_v34 = vpop.permute.xlu1 %239  ;;  %v238_v35 = vpop.permute.xlu0 %237 }
  0x8d   :  { %v245_v36 = vsel %vm1454_vm9, %v240_v34, %v234_v33  ;;  %v243_v37 = vsel %vm1454_vm9, %v236_v32, %v238_v35  ;;  %v242_v38 = vsel %vm1454_vm9, %v238_v35, %v240_v34  ;;  %vm1461_vm9 = vcmp.ge.s32.totalorder %v1014_v23, 1 }
  0x8e   :  { %748 = vmatprep.subr.msk.mxu0 %vm998_vm0, %v243_v37  ;;  %763 = vmatprep.subr.msk.mxu1 %vm1003_vm2, %v245_v36 }
  0x8f   :  { %310 = vmatpush1.msra.mxu0 %v244_v39  ;;  %381 = vmatpush1.msra.mxu1 %v242_v38 }
  0x90   :  { %v211_v40 = vpop.permute.xlu1 %210  ;;  %v209_v41 = vpop.permute.xlu0 %208 }
  0x91   :  { %v219_v49 = vsel %vm1456_vm13, %v209_v41, %v211_v40 }
  0x94   :  { %v215_v44 = vpop.permute.xlu1 %214  ;;  %v213_v45 = vpop.permute.xlu0 %212 }
  0x95   :  { %v220_v46 = vsel %vm1456_vm13, %v215_v44, %v209_v41  ;;  %v217_v47 = vsel %vm1456_vm13, %v213_v45, %v215_v44  ;;  %v218_v48 = vsel %vm1456_vm13, %v211_v40, %v213_v45  ;;  %vm1459_vm13 = vcmp.lt.s32.totalorder %v985_v8, 1  ;;  %v82_v44 = vld [vmem:[%s1449_s1] sm:$0xff] }
  0x96   :  { %749 = vmatprep.subr.msk.mxu0 %vm1070_vm12, %v218_v48  ;;  %764 = vmatprep.subr.msk.mxu1 %vm1079_vm14, %v220_v46  ;;  %v1496_v45 = vmov 0 }
  0x97   :  { %750 = vmatpush1.msk.msra.mxu0 %vm1468_vm15, %v219_v49  ;;  %765 = vmatpush1.msk.msra.mxu1 %vm1461_vm9, %v217_v47 }
  0x98   :  { %v186_v50 = vpop.permute.xlu1 %185  ;;  %v184_v51 = vpop.permute.xlu0 %183 }
  0x99   :  { %v194_v57 = vsel %vm1457_vm5, %v184_v51, %v186_v50 }
  0x9c   :  { %v190_v52 = vpop.permute.xlu1 %189  ;;  %v188_v53 = vpop.permute.xlu0 %187 }
  0x9d   :  { %v195_v54 = vsel %vm1457_vm5, %v190_v52, %v184_v51  ;;  %v192_v55 = vsel %vm1457_vm5, %v188_v53, %v190_v52  ;;  %v193_v56 = vsel %vm1457_vm5, %v186_v50, %v188_v53  ;;  %vm1463_vm5 = vcmp.lt.s32.totalorder %v985_v8, 15 }
  0x9e   :  { %751 = vmatprep.subr.msk.mxu0 %vm1462_vm1, %v193_v56  ;;  %766 = vmatprep.subr.msk.mxu1 %vm1464_vm3, %v195_v54 }
  0x9f   :  { %752 = vmatpush1.msk.msra.mxu0 %vm1467_vm7, %v194_v57  ;;  %767 = vmatpush1.msk.msra.mxu1 %vm1466_vm8, %v192_v55 }
  0xa0   :  { %v161_v58 = vpop.permute.xlu1 %160  ;;  %315 = vmatprep.subr.mxu0 %v918_v3  ;;  %v159_v59 = vpop.permute.xlu0 %158  ;;  %386 = vmatprep.subr.mxu1 %v916_v2 }
  0xa1   :  { %v169_v60 = vsel %vm1459_vm13, %v159_v59, %v161_v58  ;;  %316 = vmatpush1.msra.mxu0 %v910_v1  ;;  %387 = vmatpush1.msra.mxu1 %v908_v0 }
  0xa2   :  { %753 = vmatprep.subr.msk.mxu0 %vm1458_vm10, %v169_v60  ;;  %vm1142_vm10 = vcmp.ge.s32.totalorder %v42_v16, 16 }
  0xa4   :  { %v165_v61 = vpop.permute.xlu1 %164  ;;  %v163_v62 = vpop.permute.xlu0 %162 }
  0xa5   :  { %v170_v63 = vsel %vm1459_vm13, %v165_v61, %v159_v59  ;;  %v167_v5 = vsel %vm1459_vm13, %v163_v62, %v165_v61  ;;  %v168_v6 = vsel %vm1459_vm13, %v161_v58, %v163_v62  ;;  %vm1150_vm13 = vcmp.ge.s32.totalorder %v44_v17, 16  ;;  %v568_v61 = vld [vmem:[%s1452_s4] sm:$0xff] }
  0xa6   :  { %754 = vmatpush1.msk.msra.mxu0 %vm1468_vm15, %v170_v63  ;;  %768 = vmatprep.subr.msk.mxu1 %vm1460_vm11, %v167_v5  ;;  %vm1160_vm11 = vmand %vm1142_vm10, %vm1467_vm7  ;;  %vm1495_vm7 = vcmp.ge.s32.totalorder %v1014_v23, 1 }
  0xa7   :  { %769 = vmatpush1.msk.msra.mxu1 %vm1461_vm9, %v168_v6  ;;  %vm1168_vm9 = vmand %vm1150_vm13, %vm1466_vm8  ;;  %vm1469_vm8 = vcmask 588800  }
  0xa8   :  { %v136_v7 = vpop.permute.xlu1 %135  ;;  %v134_v9 = vpop.permute.xlu0 %133 }
  0xa9   :  { %v144_v11 = vsel %vm1463_vm5, %v134_v9, %v136_v7 }
  0xaa   :  { %755 = vmatprep.subr.msk.mxu0 %vm1462_vm1, %v144_v11  ;;  %vm1465_vm1 = vcmp.lt.s32.totalorder %v985_v8, 16 }
  0xac   :  { %v140_v19 = vpop.permute.xlu1 %139  ;;  %v138_v20 = vpop.permute.xlu0 %137 }
  0xad   :  { %v145_v17 = vsel %vm1463_vm5, %v140_v19, %v134_v9  ;;  %v142_v26 = vsel %vm1463_vm5, %v138_v20, %v140_v19  ;;  %v143_v27 = vsel %vm1463_vm5, %v136_v7, %v138_v20  ;;  %vm1470_vm5 = vcmp.lt.s32.totalorder %v985_v8, 17 }
  0xae   :  { %756 = vmatpush1.msk.msra.mxu0 %vm1160_vm11, %v145_v17  ;;  %770 = vmatprep.subr.msk.mxu1 %vm1464_vm3, %v142_v26  ;;  %vm1492_vm3 = vcmp.ge.s32.totalorder %v992_v14, 1 }
  0xaf   :  { %771 = vmatpush1.msk.msra.mxu1 %vm1168_vm9, %v143_v27 }
  0xb0   :  { %v111_v28 = vpop.permute.xlu1 %110  ;;  %v109_v29 = vpop.permute.xlu0 %108 }
  0xb1   :  { %v119_v30 = vsel %vm1465_vm1, %v109_v29, %v111_v28 }
  0xb2   :  { %321 = vmatprep.subr.mxu0 %v119_v30 }
  0xb4   :  { %v115_v31 = vpop.permute.xlu1 %114  ;;  %v113_v32 = vpop.permute.xlu0 %112 }
  0xb5   :  { %v120_v33 = vsel %vm1465_vm1, %v115_v31, %v109_v29  ;;  %v118_v34 = vsel %vm1465_vm1, %v111_v28, %v113_v32  ;;  %v117_v35 = vsel %vm1465_vm1, %v113_v32, %v115_v31  ;;  %vm1206_vm1 = vmand %vm1142_vm10, %vm1468_vm15  ;;  %vm1498_vm15 = vcmp.ge.s32.totalorder %v994_v15, 1 }
  0xb6   :  { %757 = vmatpush1.msk.msra.mxu0 %vm1142_vm10, %v120_v33  ;;  %392 = vmatprep.subr.mxu1 %v117_v35 }
  0xb7   :  { %772 = vmatpush1.msk.msra.mxu1 %vm1150_vm13, %v118_v34 }
  0xb8   :  { %v86_v36 = vpop.permute.xlu1 %85  ;;  %v84_v37 = vpop.permute.xlu0 %83 }
  0xb9   :  { %v94_v38 = vsel %vm1470_vm5, %v84_v37, %v86_v36 }
  0xba   :  { %758 = vmatprep.subr.msk.mxu0 %vm1492_vm3, %v94_v38  ;;  %vm1217_vm3 = vmand %vm1150_vm13, %vm1495_vm7  ;;  %vm1499_vm7 = vcmp.lt.s32.totalorder %v985_v8, 111 }
  0xbb   :  { %v1497_v45 = vsel %vm1217_vm3, 4294967295, %v1496_v45 }
  0xbc   :  { %v90_v40 = vpop.permute.xlu1 %89  ;;  %v88_v41 = vpop.permute.xlu0 %87 }
  0xbd   :  { %v95_v46 = vsel %vm1470_vm5, %v90_v40, %v84_v37  ;;  %v92_v47 = vsel %vm1470_vm5, %v88_v41, %v90_v40  ;;  %v93_v48 = vsel %vm1470_vm5, %v86_v36, %v88_v41  ;;  %vm1502_vm5 = vmmov %vm1499_vm7 }
  0xbe   :  { %759 = vmatpush1.msk.msra.mxu0 %vm1206_vm1, %v95_v46  ;;  %773 = vmatprep.subr.msk.mxu1 %vm1498_vm15, %v92_v47  ;;  %vm1500_vm15 = vmmov %vm1499_vm7 }
  0xbf   :  { %760 = vmatmul.mubr.msk.f32.vlgmr.msra.gmra.mxu0 %vm1469_vm8, %v82_v44  ;;  %774 = vmatpush1.msk.msra.mxu1 %vm1217_vm3, %v93_v48  ;;  %vm1503_vm3 = vmmov %vm1502_vm5 }
  0xc0   :  { %775 = vmatmul.mubr.msk.f32.vlgmr.msra.gmra.mxu1 %vm1469_vm8, %v82_v44  ;;  %641 = vmatprep.mubr.f32.mxu0 %v871_v4  ;;  %vm1501_vm8 = vcmp.le.s32.totalorder %v1010_v22, 14 }
  0xc1   :  { %712 = vmatprep.mubr.f32.mxu1 %v871_v4 }
  0xc9   :  { %v287_v49 = vpop.permute.xlu0 %286 }
 0x17f   :  { %v359_v50 = vpop.f32.mrf.mxu0 }
 0x180   :  { %v360_v51 = vadd.f32 %v359_v50, %v287_v49  ;;  %v430_v52 = vpop.f32.mrf.mxu1 }
 0x181   :  { %v431_v53 = vadd.f32 %v430_v52, %v287_v49  ;;  %v361_v54 = vpop.f32.mrf.mxu0 }
 0x182   :  { %v1237_v55 = vmax.f32 %v360_v51, 0.0  ;;  %v362_v56 = vadd.f32 %v361_v54, %v287_v49  ;;  %v432_v58 = vpop.f32.mrf.mxu1 }
 0x183   :  { %v1239_v57 = vmax.f32 %v431_v53, 0.0  ;;  %v433_v4 = vadd.f32 %v432_v58, %v287_v49 }
 0x184   :  { %552 = vrot.lane.b32.xlu1 %v1237_v55, %s864_s23  ;;  %v1245_v59 = vmax.f32 %v362_v56, 0.0 }
 0x185   :  { %556 = vrot.lane.b32.xlu0 %v1239_v57, %s864_s23  ;;  %v1251_v60 = vmax.f32 %v433_v4, 0.0 }
 0x188   :  { %554 = vrot.lane.b32.xlu1 %v1245_v59, %s864_s23 }
 0x189   :  { %536 = vrot.lane.b32.xlu0 %v1237_v55, %s865_s0 }
 0x18c   :  { %558 = vrot.lane.b32.xlu1 %v1251_v60, %s864_s23 }
 0x18d   :  { %540 = vrot.lane.b32.xlu0 %v1239_v57, %s865_s0 }
 0x190   :  { %538 = vrot.lane.b32.xlu1 %v1245_v59, %s865_s0 }
 0x191   :  { %520 = vrot.lane.b32.xlu0 %v1237_v55, %s866_s24 }
 0x194   :  { %542 = vrot.lane.b32.xlu1 %v1251_v60, %s865_s0 }
 0x195   :  { %524 = vrot.lane.b32.xlu0 %v1239_v57, %s866_s24 }
 0x198   :  { %522 = vrot.lane.b32.xlu1 %v1245_v59, %s866_s24 }
 0x199   :  { %504 = vrot.lane.b32.xlu0 %v1237_v55, %s867_s25 }
 0x19c   :  { %526 = vrot.lane.b32.xlu1 %v1251_v60, %s866_s24 }
 0x19d   :  { %508 = vrot.lane.b32.xlu0 %v1239_v57, %s867_s25 }
 0x1a0   :  { %506 = vrot.lane.b32.xlu1 %v1245_v59, %s867_s25 }
 0x1a1   :  { %488 = vrot.lane.b32.xlu0 %v1237_v55, %s868_s26 }
 0x1a4   :  { %510 = vrot.lane.b32.xlu1 %v1251_v60, %s867_s25 }
 0x1a5   :  { %492 = vrot.lane.b32.xlu0 %v1239_v57, %s868_s26 }
 0x1a8   :  { %490 = vrot.lane.b32.xlu1 %v1245_v59, %s868_s26 }
 0x1a9   :  { %472 = vrot.lane.b32.xlu0 %v1237_v55, %s869_s27 }
 0x1ac   :  { %494 = vrot.lane.b32.xlu1 %v1251_v60, %s868_s26 }
 0x1ad   :  { %476 = vrot.lane.b32.xlu0 %v1239_v57, %s869_s27 }
 0x1b0   :  { %474 = vrot.lane.b32.xlu1 %v1245_v59, %s869_s27 }
 0x1b1   :  { %456 = vrot.lane.b32.xlu0 %v1237_v55, %s870_s28 }
 0x1b4   :  { %478 = vrot.lane.b32.xlu1 %v1251_v60, %s869_s27 }
 0x1b5   :  { %460 = vrot.lane.b32.xlu0 %v1239_v57, %s870_s28 }
 0x1b8   :  { %458 = vrot.lane.b32.xlu1 %v1245_v59, %s870_s28 }
 0x1b9   :  { %440 = vrot.lane.b32.xlu0 %v1237_v55, %s873_s29 }
 0x1bc   :  { %462 = vrot.lane.b32.xlu1 %v1251_v60, %s870_s28 }
 0x1bd   :  { %444 = vrot.lane.b32.xlu0 %v1239_v57, %s873_s29 }
 0x1c0   :  { %442 = vrot.lane.b32.xlu1 %v1245_v59, %s873_s29 }
 0x1c1   :  { %571 = vperm.xlu0 %818, %v568_v61  }
 0x1c4   :  { %446 = vrot.lane.b32.xlu1 %v1251_v60, %s873_s29 }
 0x1f6   :  { %v553_v62 = vpop.permute.xlu1 %552 }
 0x1f7   :  { %v557_v63 = vpop.permute.xlu0 %556 }
 0x1fa   :  { %v555_v5 = vpop.permute.xlu1 %554 }
 0x1fb   :  { %v561_v6 = vsel %vm1499_vm7, %v555_v5, %v557_v63  ;;  %v562_v7 = vsel %vm1500_vm15, %v553_v62, %v555_v5  ;;  %v537_v9 = vpop.permute.xlu0 %536  ;;  %vm1504_vm7 = vcmp.le.s32.totalorder %v1014_v23, 14 }
 0x1fc   :  { %776 = vmatprep.subr.msk.mxu0 %vm1020_vm4, %v561_v6  ;;  %vm1505_vm4 = vcmp.lt.s32.totalorder %v985_v8, 112 }
 0x1fd   :  { %777 = vmatpush1.msk.msra.mxu0 %vm1501_vm8, %v562_v7  ;;  %vm1506_vm8 = vmmov %vm1505_vm4 }
 0x1fe   :  { %v559_v11 = vpop.permute.xlu1 %558 }
 0x1ff   :  { %v560_v19 = vsel %vm1502_vm5, %v557_v63, %v559_v11  ;;  %v563_v20 = vsel %vm1503_vm3, %v559_v11, %v553_v62  ;;  %v541_v17 = vpop.permute.xlu0 %540  ;;  %vm1507_vm5 = vmmov %vm1505_vm4  ;;  %vm1509_vm3 = vcmp.lt.s32.totalorder %v985_v8, 113 }
 0x200   :  { %791 = vmatprep.subr.msk.mxu1 %vm1029_vm6, %v563_v20  ;;  %vm1508_vm6 = vmmov %vm1505_vm4  ;;  %v439_v20 = vld [vmem:[%s1451_s3] sm:$0xff]  ;;  %s874_s3 = smov [#allocation5]  }
 0x201   :  { %792 = vmatpush1.msk.msra.mxu1 %vm1504_vm7, %v560_v19  ;;  %vm1510_vm15 = vmmov %vm1509_vm3  ;;  %s737_s10 = sshll.u32 %s874_s3, 4  ;;  %s738_s10 = int_to_ptr.vmem [resolvable:$true] %s737_s10 }
 0x202   :  { %v539_v26 = vpop.permute.xlu1 %538  ;;  %vm1512_vm7 = vmmov %vm1509_vm3  ;;  %s839_s11 = scalar_lea.vmem %s738_s10, 512  ;;  %p844_p6 = scmp.lt.s32.totalorder %s738_s10, %s738_s10 }
 0x203   :  { %v545_v24 = vsel %vm1505_vm4, %v539_v26, %v541_v17  ;;  %v546_v27 = vsel %vm1506_vm8, %v537_v9, %v539_v26  ;;  %v521_v28 = vpop.permute.xlu0 %520  ;;  %vm1514_vm4 = vcmp.ge.s32.totalorder %v1014_v23, 1  ;;  %p840_p5 = scmp.ne.s32.totalorder %s738_s10, %s839_s11  ;;  %p845_p7 = scmp.lt.s32.totalorder %s839_s11, %s839_s11 }
 0x204   :  { %778 = vmatprep.subr.msk.mxu0 %vm998_vm0, %v545_v24  ;;  %vm1511_vm0 = vcmp.ge.s32.totalorder %v1010_v22, 1 }
 0x205   :  { %594 = vmatpush1.msra.mxu0 %v546_v27  ;;  %p846_p8 = por %p845_p7, %p844_p6 }
 0x206   :  { %v543_v29 = vpop.permute.xlu1 %542 }
 0x207   :  { %v544_v25 = vsel %vm1507_vm5, %v541_v17, %v543_v29  ;;  %v547_v30 = vsel %vm1508_vm6, %v543_v29, %v537_v9  ;;  %v525_v31 = vpop.permute.xlu0 %524  ;;  %vm1517_vm5 = vcmp.le.s32.totalorder %v992_v14, 14  ;;  %vm1518_vm6 = vcmp.le.s32.totalorder %v1010_v22, 14  ;;  %p847_p9 = pnand %p846_p8, %p840_p5 }
 0x208   :  { %793 = vmatprep.subr.msk.mxu1 %vm1003_vm2, %v547_v30  ;;  %vm1513_vm2 = vmmov %vm1509_vm3 }
 0x209   :  { %665 = vmatpush1.msra.mxu1 %v544_v25 }
 0x20a   :  { %v523_v32 = vpop.permute.xlu1 %522 }
 0x20b   :  { %v529_v33 = vsel %vm1509_vm3, %v523_v32, %v525_v31  ;;  %v530_v18 = vsel %vm1510_vm15, %v521_v28, %v523_v32  ;;  %v505_v34 = vpop.permute.xlu0 %504  ;;  %vm1521_vm15 = vcmp.le.s32.totalorder %v994_v15, 14 }
 0x20c   :  { %779 = vmatprep.subr.msk.mxu0 %vm1070_vm12, %v529_v33  ;;  %vm1515_vm12 = vcmp.lt.s32.totalorder %v985_v8, 127 }
 0x20d   :  { %780 = vmatpush1.msk.msra.mxu0 %vm1511_vm0, %v530_v18  ;;  %vm1516_vm8 = vmmov %vm1515_vm12  ;;  %vm1522_vm0 = vcmp.le.s32.totalorder %v1014_v23, 14 }
 0x20e   :  { %v527_v35 = vpop.permute.xlu1 %526  ;;  %vm1520_vm3 = vmmov %vm1516_vm8 }
 0x20f   :  { %v528_v21 = vsel %vm1512_vm7, %v525_v31, %v527_v35  ;;  %v531_v36 = vsel %vm1513_vm2, %v527_v35, %v521_v28  ;;  %v509_v37 = vpop.permute.xlu0 %508  ;;  %vm1523_vm7 = vcmp.lt.s32.totalorder %v985_v8, 1  ;;  %vm1524_vm2 = vcmp.ge.s32.totalorder %v992_v14, 1 }
 0x210   :  { %794 = vmatprep.subr.msk.mxu1 %vm1079_vm14, %v531_v36  ;;  %vm1519_vm14 = vmmov %vm1516_vm8 }
 0x211   :  { %795 = vmatpush1.msk.msra.mxu1 %vm1514_vm4, %v528_v21  ;;  %vm1525_vm4 = vmmov %vm1523_vm7 }
 0x212   :  { %v507_v38 = vpop.permute.xlu1 %506 }
 0x213   :  { %v513_v42 = vsel %vm1515_vm12, %v507_v38, %v509_v37  ;;  %v514_v40 = vsel %vm1516_vm8, %v505_v34, %v507_v38  ;;  %v489_v41 = vpop.permute.xlu0 %488  ;;  %vm1526_vm12 = vmmov %vm1525_vm4 }
 0x214   :  { %781 = vmatprep.subr.msk.mxu0 %vm1517_vm5, %v513_v42  ;;  %vm1527_vm8 = vmmov %vm1525_vm4  ;;  %vm1528_vm5 = vcmp.ge.s32.totalorder %v1010_v22, 1 }
 0x215   :  { %782 = vmatpush1.msk.msra.mxu0 %vm1518_vm6, %v514_v40  ;;  %vm1529_vm6 = vcmp.ge.s32.totalorder %v994_v15, 1 }
 0x216   :  { %599 = vmatprep.subr.mxu0 %v1245_v59  ;;  %v511_v43 = vpop.permute.xlu1 %510 }
 0x217   :  { %v512_v44 = vsel %vm1519_vm14, %v509_v37, %v511_v43  ;;  %v515_v46 = vsel %vm1520_vm3, %v511_v43, %v505_v34  ;;  %v493_v47 = vpop.permute.xlu0 %492  ;;  %600 = vmatpush1.msra.mxu0 %v1237_v55  ;;  %vm1530_vm14 = vcmp.ge.s32.totalorder %v1014_v23, 1  ;;  %vm1531_vm3 = vcmp.lt.s32.totalorder %v985_v8, 15 }
 0x218   :  { %796 = vmatprep.subr.msk.mxu1 %vm1521_vm15, %v515_v46  ;;  %vm1532_vm15 = vcmp.le.s32.totalorder %v992_v14, 14 }
 0x219   :  { %797 = vmatpush1.msk.msra.mxu1 %vm1522_vm0, %v512_v44  ;;  %vm1533_vm0 = vmmov %vm1531_vm3 }
 0x21a   :  { %670 = vmatprep.subr.mxu1 %v1251_v60  ;;  %v491_v48 = vpop.permute.xlu1 %490 }
 0x21b   :  { %v498_v49 = vsel %vm1523_vm7, %v489_v41, %v491_v48  ;;  %v473_v50 = vpop.permute.xlu0 %472  ;;  %671 = vmatpush1.msra.mxu1 %v1239_v57  ;;  %v497_v55 = vsel %vm1527_vm8, %v491_v48, %v493_v47  ;;  %vm1534_vm7 = vmmov %vm1533_vm0 }
 0x21c   :  { %783 = vmatprep.subr.msk.mxu0 %vm1524_vm2, %v498_v49  ;;  %vm1535_vm2 = vmmov %vm1533_vm0 }
 0x21e   :  { %v495_v51 = vpop.permute.xlu1 %494 }
 0x21f   :  { %v496_v52 = vsel %vm1525_vm4, %v493_v47, %v495_v51  ;;  %v499_v53 = vsel %vm1526_vm12, %v495_v51, %v489_v41  ;;  %v477_v54 = vpop.permute.xlu0 %476  ;;  %vm1536_vm4 = vcmp.le.s32.totalorder %v994_v15, 14  ;;  %vm1537_vm12 = vcmp.lt.s32.totalorder %v985_v8, 16 }
 0x220   :  { %784 = vmatpush1.msk.msra.mxu0 %vm1528_vm5, %v499_v53  ;;  %798 = vmatprep.subr.msk.mxu1 %vm1529_vm6, %v496_v52  ;;  %vm1538_vm8 = vmmov %vm1537_vm12  ;;  %vm1542_vm6 = vcmp.ge.s32.totalorder %v992_v14, 1 }
 0x221   :  { %799 = vmatpush1.msk.msra.mxu1 %vm1530_vm14, %v497_v55  ;;  %vm1539_vm5 = vmmov %vm1538_vm8 }
 0x222   :  { %v475_v56 = vpop.permute.xlu1 %474 }
 0x223   :  { %v482_v57 = vsel %vm1531_vm3, %v473_v50, %v475_v56  ;;  %v457_v58 = vpop.permute.xlu0 %456  ;;  %v481_v60 = vsel %vm1535_vm2, %v475_v56, %v477_v54  ;;  %vm1546_vm3 = vcmp.ge.s32.totalorder %v994_v15, 1 }
 0x224   :  { %785 = vmatprep.subr.msk.mxu0 %vm1532_vm15, %v482_v57  ;;  %vm1547_vm15 = vcmask 588800  }
 0x226   :  { %v479_v59 = vpop.permute.xlu1 %478 }
 0x227   :  { %v480_v4 = vsel %vm1533_vm0, %v477_v54, %v479_v59  ;;  %v483_v22 = vsel %vm1534_vm7, %v479_v59, %v473_v50  ;;  %v461_v23 = vpop.permute.xlu0 %460  ;;  %vm1548_vm0 = vnez %v1497_v45  ;;  %vm1549_vm7 = vmmov %vm1547_vm15 }
 0x228   :  { %786 = vmatpush1.msk.msra.mxu0 %vm1160_vm11, %v483_v22  ;;  %800 = vmatprep.subr.msk.mxu1 %vm1536_vm4, %v480_v4  ;;  %vm1540_vm11 = vmmov %vm1539_vm5 }
 0x229   :  { %801 = vmatpush1.msk.msra.mxu1 %vm1168_vm9, %v481_v60  ;;  %vm1541_vm9 = vcmp.lt.s32.totalorder %v985_v8, 17 }
 0x22a   :  { %v459_v61 = vpop.permute.xlu1 %458  ;;  %vm1543_vm14 = vmmov %vm1541_vm9 }
 0x22b   :  { %v466_v62 = vsel %vm1537_vm12, %v457_v58, %v459_v61  ;;  %v465_v6 = vsel %vm1540_vm11, %v459_v61, %v461_v23  ;;  %v441_v7 = vpop.permute.xlu0 %440 }
 0x22c   :  { %605 = vmatprep.subr.mxu0 %v466_v62 }
 0x22e   :  { %v463_v63 = vpop.permute.xlu1 %462 }
 0x22f   :  { %v467_v5 = vsel %vm1538_vm8, %v463_v63, %v457_v58  ;;  %v464_v16 = vsel %vm1539_vm5, %v461_v23, %v463_v63  ;;  %v445_v11 = vpop.permute.xlu0 %444 }
 0x230   :  { %787 = vmatpush1.msk.msra.mxu0 %vm1142_vm10, %v467_v5  ;;  %676 = vmatprep.subr.mxu1 %v464_v16  ;;  %vm1544_vm10 = vmmov %vm1541_vm9 }
 0x231   :  { %802 = vmatpush1.msk.msra.mxu1 %vm1150_vm13, %v465_v6  ;;  %vm1545_vm13 = vmmov %vm1541_vm9 }
 0x232   :  { %v443_v13 = vpop.permute.xlu1 %442 }
 0x233   :  { %v450_v9 = vsel %vm1541_vm9, %v441_v7, %v443_v13  ;;  %v449_v17 = vsel %vm1545_vm13, %v443_v13, %v445_v11 }
 0x234   :  { %788 = vmatprep.subr.msk.mxu0 %vm1542_vm6, %v450_v9 }
 0x236   :  { %v447_v19 = vpop.permute.xlu1 %446 }
 0x237   :  { %v448_v10 = vsel %vm1543_vm14, %v445_v11, %v447_v19  ;;  %v451_v12 = vsel %vm1544_vm10, %v447_v19, %v441_v7 }
 0x238   :  { %789 = vmatpush1.msk.msra.mxu0 %vm1206_vm1, %v451_v12  ;;  %803 = vmatprep.subr.msk.mxu1 %vm1546_vm3, %v448_v10 }
 0x239   :  { %790 = vmatmul.mubr.msk.f32.vlgmr.msra.gmra.mxu0 %vm1547_vm15, %v439_v20  ;;  %804 = vmatpush1.msk.msra.mxu1 %vm1548_vm0, %v449_v17 }
 0x23a   :  { %805 = vmatmul.mubr.msk.f32.vlgmr.msra.gmra.mxu1 %vm1549_vm7, %v439_v20 }
 0x23c   :  { %v572_v14 = vpop.permute.xlu0 %571 }
 0x2f9   :  { %v643_v26 = vpop.f32.mrf.mxu0 }
 0x2fa   :  { %v644_v24 = vadd.f32 %v643_v26, %v572_v14  ;;  %v714_v27 = vpop.f32.mrf.mxu1 }
 0x2fb   :  { %v715_v28 = vadd.f32 %v714_v27, %v572_v14  ;;  %v645_v8 = vpop.f32.mrf.mxu0 }
 0x2fc   :  { %v719_v29 = vadd.f32 %v644_v24, %v910_v1  ;;  %v646_v39 = vadd.f32 %v645_v8, %v572_v14  ;;  %v716_v25 = vpop.f32.mrf.mxu1 }
 0x2fd   :  { %v721_v15 = vadd.f32 %v715_v28, %v908_v0  ;;  %v717_v30 = vadd.f32 %v716_v25, %v572_v14 }
 0x2fe   :  { %v723_v31 = vmax.f32 %v719_v29, 0.0  ;;  %v720_v32 = vadd.f32 %v646_v39, %v918_v3 }
 0x2ff   :  { %v725_v45 = vmax.f32 %v721_v15, 0.0  ;;  %v722_v33 = vadd.f32 %v717_v30, %v916_v2 }
 0x300   :  { %727 = vst [vmem:[#allocation5] sm:$0xff] %v723_v31  ;;  %v724_v18 = vmax.f32 %v720_v32, 0.0 }
 0x301   :  { %729 = vst [vmem:[#allocation5 + $0x10] sm:$0xff] %v725_v45  ;;  %v726_v34 = vmax.f32 %v722_v33, 0.0 }
 0x302   :  { %728 = vst [vmem:[#allocation5 + $0x8] sm:$0xff] %v724_v18 }
 0x303   :  { %730 = vst [vmem:[#allocation5 + $0x18] sm:$0xff] %v726_v34 }
 0x304   :  { %850 = shalt.err (!%p847_p9)
}
 0x305   :  { %740 = dma.vmem_to_hbm [thread:$0]  %s738_s10, 512, %s1453_s5, [#allocation4]  }
 0x306   :  { %861 = dma.done.wait [#allocation4], 512  }
 0x307   :  { %862 = vsyncadd [#allocation4], 4294966784 }
 0x308   :  { %744 = vsyncpa [#allocation3], 1 }
 0x309   :  { %745 = vsyncpa [#allocation4], 1 }

</bundles_post_ra>
